<compile_context>
chip_gen: v7x
topology: tpu7x:2x2x1
jax: 0.10.0
libtpu: 0.0.40
codegen_flags: <defaults>
</compile_context>

<pallas_src>
import jax
import jax.numpy as jnp
from jax import lax
from jax.experimental import pallas as pl
from jax.experimental.pallas import tpu as pltpu

BN_EPS = 1e-5


def _round_up(x, m):
    return (x + m - 1) // m * m


def _stats_kernel(x_ref, wbd_ref, acc_ref):
    """Pass 1: accumulate per-(replica, channel) sum and sum-of-squares of y = x @ Wbd."""
    @pl.when(pl.program_id(0) == 0)
    def _init():
        acc_ref[...] = jnp.zeros_like(acc_ref)

    y = jnp.dot(x_ref[...], wbd_ref[...], preferred_element_type=jnp.float32)
    acc_ref[0:1, :] += jnp.sum(y, axis=0, keepdims=True)
    acc_ref[1:2, :] += jnp.sum(y * y, axis=0, keepdims=True)


def _apply_kernel(x_ref, wbd_ref, scale_ref, shift_ref, m_ref, sel_ref, o_ref):
    """Pass 2: recompute y, apply folded BN (scale/shift), ReLU, row mask; lane-dense store."""
    y = jnp.dot(x_ref[...], wbd_ref[...], preferred_element_type=jnp.float32)
    z = jnp.maximum(y * scale_ref[...] + shift_ref[...], 0.0)
    # Expand per-row mask (TMr, GROUP) to the lane-packed layout (TMr, GROUP*C_out)
    # with a tiny MXU matmul against a constant 0/1 selector (MXU has plenty of slack).
    m = jnp.dot(m_ref[...], sel_ref[...], preferred_element_type=jnp.float32)
    o_ref[...] = (z * m).astype(o_ref.dtype)


def pointnet_forward(points_feature, points_mask, weight, gamma, beta, *, block_rows=1024):
    """points_feature: (B, N, C_in) f32, points_mask: (B, N) f32,
    weight: (C_out, C_in) as in nn.Linear(bias=False), gamma/beta: (C_out,)."""
    B, N, C_in = points_feature.shape
    C_out = weight.shape[0]
    M = B * N

    # Pack GROUP consecutive points per lane-dense row (GROUP * C_out = 128 lanes).
    group = 128 // C_out if (C_out <= 128 and 128 % C_out == 0) else 1
    gc_in = group * C_in
    gc_out = group * C_out

    x2d = points_feature.reshape(M, C_in).astype(jnp.float32)
    mask = points_mask.reshape(M).astype(jnp.float32)

    m4_rows = -(-M // group)                             # packed-row count
    tmr = min(block_rows, _round_up(m4_rows, 8))         # packed rows per tile (mult of 8)
    m4_pad = _round_up(m4_rows, tmr)
    m_pad = m4_pad * group
    if m_pad != M:
        # Zero rows add nothing to sum/sumsq; their outputs are sliced off below.
        x2d = jnp.pad(x2d, ((0, m_pad - M), (0, 0)))
        mask = jnp.pad(mask, (0, m_pad - M))

    x4 = x2d.reshape(m4_pad, gc_in)                      # contiguous view, no data movement
    m4 = mask.reshape(m4_pad, group)

    eye = jnp.eye(group, dtype=jnp.float32)
    wbd = jnp.kron(eye, weight.T.astype(jnp.float32))            # (gc_in, gc_out) block-diag
    sel = jnp.kron(eye, jnp.ones((1, C_out), jnp.float32))       # (group, gc_out) mask expander

    n_tiles = m4_pad // tmr

    # ---- Pass 1: cross-tile per-channel sum / sum-of-squares accumulator. ----
    stats = pl.pallas_call(
        _stats_kernel,
        out_shape=jax.ShapeDtypeStruct((2, gc_out), jnp.float32),
        grid=(n_tiles,),
        in_specs=[
            pl.BlockSpec((tmr, gc_in), lambda i: (i, 0)),
            pl.BlockSpec((gc_in, gc_out), lambda i: (0, 0)),
        ],
        out_specs=pl.BlockSpec((2, gc_out), lambda i: (0, 0)),
        compiler_params=pltpu.CompilerParams(dimension_semantics=("arbitrary",)),
    )(x4, wbd)

    # Finalize BN on tiny (C_out,) vectors: fold into per-channel scale / shift.
    ch_sum = stats[0].reshape(group, C_out).sum(axis=0)
    ch_sq = stats[1].reshape(group, C_out).sum(axis=0)
    inv_m = 1.0 / float(M)                               # padded rows contributed nothing
    mean = ch_sum * inv_m
    var = jnp.maximum(ch_sq * inv_m - mean * mean, 0.0)  # f32 accumulators; clamp fp jitter
    scale = gamma.astype(jnp.float32) * lax.rsqrt(var + BN_EPS)
    shift = beta.astype(jnp.float32) - mean * scale
    scale_t = jnp.tile(scale, group).reshape(1, gc_out)
    shift_t = jnp.tile(shift, group).reshape(1, gc_out)

    # ---- Pass 2: recompute y per tile, fused FMA + ReLU + mask, lane-dense output. ----
    out4 = pl.pallas_call(
        _apply_kernel,
        out_shape=jax.ShapeDtypeStruct((m4_pad, gc_out), points_feature.dtype),
        grid=(n_tiles,),
        in_specs=[
            pl.BlockSpec((tmr, gc_in), lambda i: (i, 0)),
            pl.BlockSpec((gc_in, gc_out), lambda i: (0, 0)),
            pl.BlockSpec((1, gc_out), lambda i: (0, 0)),
            pl.BlockSpec((1, gc_out), lambda i: (0, 0)),
            pl.BlockSpec((tmr, group), lambda i: (i, 0)),
            pl.BlockSpec((group, gc_out), lambda i: (0, 0)),
        ],
        out_specs=pl.BlockSpec((tmr, gc_out), lambda i: (i, 0)),
        compiler_params=pltpu.CompilerParams(dimension_semantics=("parallel",)),
    )(x4, wbd, scale_t, shift_t, m4, sel)

    out2d = out4.reshape(m_pad, C_out)[:M]               # free contiguous view + drop padding
    return out2d.reshape(B, N, C_out)


def pointnet_reference(points_feature, points_mask, weight, gamma, beta):
    """Pure-JAX reference mirroring the torch forward (training-mode BN)."""
    y = jnp.einsum("bnc,oc->bno", points_feature, weight)
    mean = jnp.mean(y, axis=(0, 1), keepdims=True)
    var = jnp.mean((y - mean) ** 2, axis=(0, 1), keepdims=True)
    z = (y - mean) / jnp.sqrt(var + BN_EPS) * gamma + beta
    return jnp.maximum(z, 0.0) * points_mask[..., None]


if __name__ == "__main__":
    key = jax.random.PRNGKey(0)
    B, N, C_in, C_out = 2, 64, 16, 32

    k1, k2, k3 = jax.random.split(key, 3)
    points_feature = jax.random.normal(k1, (B, N, C_in), dtype=jnp.float32)
    points_mask = (jax.random.uniform(k2, (B, N)) > 0.2).astype(jnp.float32)

    # nn.Linear(in, out, bias=False): weight shape (C_out, C_in); BN default gamma=1, beta=0.
    weight = jax.random.normal(k3, (C_out, C_in), dtype=jnp.float32) * 0.1
    gamma = jnp.ones((C_out,), dtype=jnp.float32)
    beta = jnp.zeros((C_out,), dtype=jnp.float32)

    out = pointnet_forward(points_feature, points_mask, weight, gamma, beta)
    out = jax.block_until_ready(out)

    ref = pointnet_reference(points_feature, points_mask, weight, gamma, beta)
    assert out.shape == (B, N, C_out)
    assert jnp.allclose(out, ref, atol=1e-4, rtol=1e-4), "mismatch vs reference"

    print("KERNEL_OK")
</pallas_src>

<mosaic_0001>
module attributes {stable_mosaic.version = 11 : i64} {
  func.func @_stats_kernel(%arg0: i32, %arg1: memref<32x64xf32, #tpu.memory_space<vmem>>, %arg2: memref<64x128xf32, #tpu.memory_space<vmem>>, %arg3: memref<2x128xf32, #tpu.memory_space<vmem>>) attributes {dimension_semantics = [#tpu.dimension_semantics<arbitrary>], iteration_bounds = array<i64: 1>, scalar_prefetch = 0 : i64, scratch_operands = 0 : i64, tpu.core_type = #tpu.core_type<tc>, window_params = [{transform_indices = @transform_0, window_bounds = array<i64: 32, 64>}, {pipeline_mode = #tpu.pipeline_mode<synchronous>, transform_indices = @transform_1, window_bounds = array<i64: 64, 128>}, {pipeline_mode = #tpu.pipeline_mode<synchronous>, transform_indices = @transform_2, window_bounds = array<i64: 2, 128>}]} {
    %c0_i32 = arith.constant 0 : i32
    %0 = arith.cmpi eq, %arg0, %c0_i32 : i32
    %1 = arith.extui %0 : i1 to i32
    %c0_i32_0 = arith.constant 0 : i32
    %2 = arith.cmpi ne, %1, %c0_i32_0 : i32
    scf.if %2 {
      %cst_13 = arith.constant 0.000000e+00 : f32
      %17 = vector.broadcast %cst_13 : f32 to vector<2x128xf32>
      %c0_14 = arith.constant 0 : index
      %c0_15 = arith.constant 0 : index
      %18 = vector.load %arg3[%c0_14, %c0_15] : memref<2x128xf32, #tpu.memory_space<vmem>>, vector<2x128xf32>
      tpu.vector_store %arg3[%c0_14, %c0_15], %17 {strides = array<i32>} : memref<2x128xf32, #tpu.memory_space<vmem>>, vector<2x128xf32>,
    } else {
    }
    %c0 = arith.constant 0 : index
    %c0_1 = arith.constant 0 : index
    %3 = vector.load %arg1[%c0, %c0_1] : memref<32x64xf32, #tpu.memory_space<vmem>>, vector<32x64xf32>
    %c0_2 = arith.constant 0 : index
    %c0_3 = arith.constant 0 : index
    %4 = vector.load %arg2[%c0_2, %c0_3] : memref<64x128xf32, #tpu.memory_space<vmem>>, vector<64x128xf32>
    %cst = arith.constant dense<0.000000e+00> : vector<32x128xf32>
    %5 = tpu.matmul %3, %4, %cst {dimension_numbers = #tpu.dot_dimension_numbers<[1], [0], [0], [1], [0, 0, 1, 1], [], []>} : vector<32x64xf32>, vector<64x128xf32>, vector<32x128xf32> -> vector<32x128xf32>
    %c0_4 = arith.constant 0 : index
    %c0_5 = arith.constant 0 : index
    %6 = vector.load %arg3[%c0_4, %c0_5] : memref<2x128xf32, #tpu.memory_space<vmem>>, vector<1x128xf32>
    %cst_6 = arith.constant dense<0.000000e+00> : vector<128xf32>
    %7 = vector.multi_reduction <add>, %5, %cst_6 [0] : vector<32x128xf32> to vector<128xf32>
    %8 = vector.shape_cast %7 : vector<128xf32> to vector<1x128xf32>
    %9 = arith.addf %6, %8 : vector<1x128xf32>
    %c0_7 = arith.constant 0 : index
    %c0_8 = arith.constant 0 : index
    %10 = vector.load %arg3[%c0_7, %c0_8] : memref<2x128xf32, #tpu.memory_space<vmem>>, vector<1x128xf32>
    tpu.vector_store %arg3[%c0_7, %c0_8], %9 {strides = array<i32>} : memref<2x128xf32, #tpu.memory_space<vmem>>, vector<1x128xf32>,
    %c1 = arith.constant 1 : index
    %c0_9 = arith.constant 0 : index
    %11 = vector.load %arg3[%c1, %c0_9] : memref<2x128xf32, #tpu.memory_space<vmem>>, vector<1x128xf32>
    %12 = arith.mulf %5, %5 : vector<32x128xf32>
    %cst_10 = arith.constant dense<0.000000e+00> : vector<128xf32>
    %13 = vector.multi_reduction <add>, %12, %cst_10 [0] : vector<32x128xf32> to vector<128xf32>
    %14 = vector.shape_cast %13 : vector<128xf32> to vector<1x128xf32>
    %15 = arith.addf %11, %14 : vector<1x128xf32>
    %c1_11 = arith.constant 1 : index
    %c0_12 = arith.constant 0 : index
    %16 = vector.load %arg3[%c1_11, %c0_12] : memref<2x128xf32, #tpu.memory_space<vmem>>, vector<1x128xf32>
    tpu.vector_store %arg3[%c1_11, %c0_12], %15 {strides = array<i32>} : memref<2x128xf32, #tpu.memory_space<vmem>>, vector<1x128xf32>,
    return
  }
  func.func @transform_0(%arg0: i32) -> (i32, i32) {
    %c0_i32 = arith.constant 0 : i32
    %c0_i32_0 = arith.constant 0 : i32
    return %arg0, %c0_i32 : i32, i32
  }
  func.func @transform_1(%arg0: i32) -> (i32, i32) {
    %c0_i32 = arith.constant 0 : i32
    %c0_i32_0 = arith.constant 0 : i32
    %c0_i32_1 = arith.constant 0 : i32
    return %c0_i32, %c0_i32_0 : i32, i32
  }
  func.func @transform_2(%arg0: i32) -> (i32, i32) {
    %c0_i32 = arith.constant 0 : i32
    %c0_i32_0 = arith.constant 0 : i32
    %c0_i32_1 = arith.constant 0 : i32
    return %c0_i32, %c0_i32_0 : i32, i32
  }
}

</mosaic_0001>

<bundles_post_ra>
// kernel: tpu_custom_call.1
= control target key start
LH: loop header
LB: loop body
LE: loop exit
PB: predicated region body
PF: predicated region fallthrough
CT: control target
= control target key end

     0   :  { %7 = vsyncpa [#allocation3], 0  ;;  %s400_s0 = inlined_call_operand.hbm [shape: f32[32,64], index: 0, kind: input, shape index: {}]   ;;  %s401_s1 = inlined_call_operand.hbm [shape: f32[64,128], index: 1, kind: input, shape index: {}]   ;;  %s402_s2 = inlined_call_operand.hbm [shape: f32[2,128], index: 2, kind: output, shape index: {}]  }
   0x1   :  { %8 = vsyncpa [#allocation6], 0 }
   0x2   :  { %9 = vsyncpa [#allocation4], 0  ;;  %s339_s9 = smov [#allocation2]   ;;  %s267_s13 = scalar_lea.hbm %s400_s0, 512 }
   0x3   :  { %s15_s10 = sshll.u32 %s339_s9, 4  ;;  %p268_p0 = scmp.ne.s32.totalorder %s400_s0, %s267_s13  ;;  %s16_s10 = int_to_ptr.vmem [resolvable:$true] %s15_s10 }
   0x4   :  { %p271_p1 = scmp.lt.u32.totalorder %s267_s13, %s400_s0 }
   0x6   :  { %p273_p2 = pnand %p271_p1, %p268_p0 }
   0x8   :  { %276 = shalt.err (!%p273_p2)
}
   0x9   :  { %s277_s18 = scalar_lea.vmem %s16_s10, 512  ;;  %p282_p4 = scmp.lt.s32.totalorder %s16_s10, %s16_s10 }
   0xa   :  { %p278_p3 = scmp.ne.s32.totalorder %s16_s10, %s277_s18  ;;  %p283_p5 = scmp.lt.s32.totalorder %s277_s18, %s277_s18 }
   0xc   :  { %p284_p6 = por %p283_p5, %p282_p4 }
   0xe   :  { %p285_p7 = pnand %p284_p6, %p278_p3 }
  0x10   :  { %288 = shalt.err (!%p285_p7)
}
  0x11   :  { %s340_s19 = smov 128   ;;  %s341_s20 = smov 8  }
  0x12   :  { %21 = dma.hbm_to_vmem [thread:$0]  %s400_s0, 512, %s16_s10, [#allocation3], %s340_s19, %s340_s19, %s341_s20  }
  0x13   :  { %s342_s23 = smov [#allocation5]   ;;  %s289_s27 = scalar_lea.hbm %s401_s1, 1024 }
  0x14   :  { %s27_s24 = sshll.u32 %s342_s23, 4  ;;  %p290_p8 = scmp.ne.s32.totalorder %s401_s1, %s289_s27  ;;  %s28_s24 = int_to_ptr.vmem [resolvable:$true] %s27_s24 }
  0x15   :  { %p293_p9 = scmp.lt.u32.totalorder %s289_s27, %s401_s1 }
  0x17   :  { %p295_p10 = pnand %p293_p9, %p290_p8 }
  0x19   :  { %298 = shalt.err (!%p295_p10)
}
  0x1a   :  { %s299_s4 = scalar_lea.vmem %s28_s24, 1024  ;;  %p304_p12 = scmp.lt.s32.totalorder %s28_s24, %s28_s24 }
  0x1b   :  { %p300_p11 = scmp.ne.s32.totalorder %s28_s24, %s299_s4  ;;  %p305_p13 = scmp.lt.s32.totalorder %s299_s4, %s299_s4 }
  0x1d   :  { %p306_p0 = por %p305_p13, %p304_p12 }
  0x1f   :  { %p307_p1 = pnand %p306_p0, %p300_p11 }
  0x21   :  { %310 = shalt.err (!%p307_p1)
}
  0x22   :  { %33 = dma.hbm_to_vmem [thread:$0]  %s401_s1, 1024, %s28_s24, [#allocation6], %s340_s19, %s340_s19, %s341_s20  }
  0x23   :  { %333 = dma.done.wait [#allocation3], 512  }
  0x24   :  { %334 = vsyncadd [#allocation3], 4294966784 }
  0x25   :  { %335 = dma.done.wait [#allocation6], 1024  }
  0x26   :  { %336 = vsyncadd [#allocation6], 4294966272  ;;  %v49_v0 = vld [vmem:[#allocation5] sm:$0xff]  ;;  %v50_v1 = vld [vmem:[#allocation5 + $0x8] sm:$0xff]  ;;  %vm57_vm0 = vcmask 523264   ;;  %v343_v16 = vmov 0.0  }
  0x27   :  { %v51_v2 = vld [vmem:[#allocation5 + $0x10] sm:$0xff]  ;;  %v237_v3 = vpack.c.bf16 %v50_v1, %v49_v0  ;;  %v52_v4 = vld [vmem:[#allocation5 + $0x18] sm:$0xff]  ;;  %v53_v6 = vld [vmem:[#allocation5 + $0x20] sm:$0xff]  ;;  %44 = vst [vmem:[#allocation7] sm:$0x3] %v343_v16  ;;  %s344_s1 = smov [#allocation7]  }
  0x28   :  { %v241_v5 = vpack.c.bf16 %v52_v4, %v51_v2  ;;  %v54_v7 = vld [vmem:[#allocation5 + $0x28] sm:$0xff]  ;;  %v45_v8 = vld [vmem:[#allocation2] sm:$0xff]  ;;  %v47_v9 = vld [vmem:[#allocation2 + $0x10] sm:$0xff]  ;;  %s189_s6 = sshll.u32 %s344_s1, 4  ;;  %s190_s6 = int_to_ptr.vmem [resolvable:$true] %s189_s6 }
  0x29   :  { %238 = vmatprep.subr.bf16.mxu0 %v237_v3  ;;  %253 = vmatprep.subr.bf16.mxu1 %v237_v3  ;;  %v245_v10 = vpack.c.bf16 %v54_v7, %v53_v6  ;;  %v55_v11 = vld [vmem:[#allocation5 + $0x30] sm:$0xff]  ;;  %v56_v12 = vld [vmem:[#allocation5 + $0x38] sm:$0xff]  ;;  %v46_v14 = vld [vmem:[#allocation2 + $0x8] sm:$0xff]  ;;  %s311_s7 = scalar_lea.vmem %s190_s6, 32  ;;  %p316_p3 = scmp.lt.s32.totalorder %s190_s6, %s190_s6 }
  0x2a   :  { %240 = vmatpush3.bf16.msra.mxu0 %v237_v3  ;;  %257 = vmatpush3.bf16.msra.mxu1 %v237_v3  ;;  %v249_v13 = vpack.c.bf16 %v56_v12, %v55_v11  ;;  %v48_v15 = vld [vmem:[#allocation2 + $0x18] sm:$0xff]  ;;  %p312_p2 = scmp.ne.s32.totalorder %s190_s6, %s311_s7  ;;  %p317_p4 = scmp.lt.s32.totalorder %s311_s7, %s311_s7 }
  0x2b   :  { %242 = vmatprep.subr.bf16.mxu0 %v241_v5  ;;  %254 = vmatprep.subr.bf16.mxu1 %v241_v5 }
  0x2c   :  { %231 = vmatprep.mubr.msk.f32.mxu0 %vm57_vm0, %v45_v8  ;;  %234 = vmatprep.mubr.msk.f32.mxu1 %vm57_vm0, %v47_v9  ;;  %p318_p5 = por %p317_p4, %p316_p3 }
  0x2e   :  { %244 = vmatpush3.bf16.msra.mxu0 %v241_v5  ;;  %258 = vmatpush3.bf16.msra.mxu1 %v241_v5  ;;  %v155_v40 = vld [vmem:[#allocation7] sm:$0x1]  ;;  %v167_v43 = vld [vmem:[#allocation7 + $0x1] sm:$0x1]  ;;  %p319_p6 = pnand %p318_p5, %p312_p2 }
  0x2f   :  { %246 = vmatprep.subr.bf16.mxu0 %v245_v10  ;;  %255 = vmatprep.subr.bf16.mxu1 %v245_v10 }
  0x32   :  { %248 = vmatpush3.bf16.msra.mxu0 %v245_v10  ;;  %259 = vmatpush3.bf16.msra.mxu1 %v245_v10 }
  0x33   :  { %250 = vmatprep.subr.bf16.mxu0 %v249_v13  ;;  %256 = vmatprep.subr.bf16.mxu1 %v249_v13 }
  0x36   :  { %252 = vmatpush3.bf16.msra.mxu0 %v249_v13  ;;  %260 = vmatpush3.bf16.msra.mxu1 %v249_v13 }
  0x39   :  { %232 = vmatmul.mubr.msk.f32.vlgmr.msra.gmra.mrb[0].mxu0 %vm57_vm0, %v46_v14  ;;  %235 = vmatmul.mubr.msk.f32.vlgmr.msra.gmra.mrb[0].mxu1 %vm57_vm0, %v48_v15 }
 0x10c   :  { %v233_v17 = vpop.f32.mrb[0].mxu0  ;;  %v236_v18 = vpop.f32.mrb[0].mxu1 }
 0x10d   :  { %v169_v19 = vmul.f32 %v233_v17, %v233_v17  ;;  %v136_v20 = vpop.f32.mrb[1].mxu0  ;;  %v146_v21 = vpop.f32.mrb[1].mxu1  ;;  %v171_v27 = vmul.f32 %v236_v18, %v236_v18 }
 0x10e   :  { %v156_v22 = vadd.f32 %v233_v17, %v136_v20  ;;  %v168_v23 = vmul.f32 %v136_v20, %v136_v20  ;;  %v170_v24 = vmul.f32 %v146_v21, %v146_v21 }
 0x110   :  { %v172_v25 = vadd.f32 %v169_v19, %v168_v23  ;;  %v157_v26 = vadd.f32 %v156_v22, %v146_v21 }
 0x112   :  { %v158_v28 = vadd.f32 %v236_v18, %v157_v26  ;;  %v173_v29 = vadd.f32 %v172_v25, %v170_v24 }
 0x114   :  { %v159_v30 = vrot.slane %v158_v28, 4  ;;  %v174_v31 = vadd.f32 %v173_v29, %v171_v27 }
 0x116   :  { %v160_v32 = vadd.f32 %v159_v30, %v158_v28  ;;  %v175_v33 = vrot.slane %v174_v31, 4 }
 0x118   :  { %v161_v34 = vrot.slane %v160_v32, 2  ;;  %v176_v35 = vadd.f32 %v175_v33, %v174_v31 }
 0x11a   :  { %v162_v36 = vadd.f32 %v161_v34, %v160_v32  ;;  %v177_v37 = vrot.slane %v176_v35, 2 }
 0x11c   :  { %v163_v38 = vrot.slane %v162_v36, 1  ;;  %v178_v39 = vadd.f32 %v177_v37, %v176_v35 }
 0x11e   :  { %v164_v41 = vadd.f32 %v163_v38, %v162_v36  ;;  %v179_v42 = vrot.slane %v178_v39, 1 }
 0x120   :  { %v165_v44 = vadd.f32 %v164_v41, %v155_v40  ;;  %v180_v45 = vadd.f32 %v179_v42, %v178_v39 }
 0x122   :  { %166 = vst [vmem:[#allocation7] sm:$0x1] %v165_v44  ;;  %v181_v46 = vadd.f32 %v180_v45, %v167_v43 }
 0x124   :  { %182 = vst [vmem:[#allocation7 + $0x1] sm:$0x1] %v181_v46 }
 0x125   :  { %322 = shalt.err (!%p319_p6)
}
 0x126   :  { %s323_s10 = scalar_lea.hbm %s402_s2, 32 }
 0x127   :  { %p324_p7 = scmp.ne.s32.totalorder %s402_s2, %s323_s10  ;;  %p327_p8 = scmp.lt.u32.totalorder %s323_s10, %s402_s2 }
 0x129   :  { %p329_p9 = pnand %p327_p8, %p324_p7 }
 0x12b   :  { %332 = shalt.err (!%p329_p9)
}
 0x12c   :  { %192 = dma.vmem_to_hbm [thread:$0]  %s190_s6, 32, %s402_s2, [#allocation4]  }
 0x12d   :  { %337 = dma.done.wait [#allocation4], 32  }
 0x12e   :  { %338 = vsyncadd [#allocation4], 4294967264 }
 0x12f   :  { %196 = vsyncpa [#allocation3], 1 }
 0x130   :  { %197 = vsyncpa [#allocation6], 1 }
 0x131   :  { %198 = vsyncpa [#allocation4], 1 }

</bundles_post_ra>
